<compile_context>
chip_gen: v7x
topology: tpu7x:2x2x1
jax: 0.10.0
libtpu: 0.0.40
codegen_flags: <defaults>
</compile_context>

<pallas_src>
import jax
import jax.numpy as jnp
from jax import lax
from jax.experimental import pallas as pl
from jax.experimental.pallas import tpu as pltpu

_INV_SQRT2 = 0.7071067811865476  # 1/sqrt(2)


def _transition_kernel(s_ref, w1_ref, b1_ref, w2_ref, b2_ref, w3_ref, b3_ref,
                       o_ref):
    """One (tm, C) row tile of  s + L3(GELU(L2(GELU(L1(s))))).

    prepare_params() folded the erf-GELU 1/sqrt(2) pre-scale AND the GELU 0.5
    output scale into the weight chain, so the in-kernel nonlinearity reduces
    to y * (1 + erf(y)).  All matmuls accumulate in f32 (weights may be bf16).
    """
    y = jnp.dot(s_ref[...].astype(w1_ref.dtype), w1_ref[...],
                preferred_element_type=jnp.float32) + b1_ref[...]
    y = y * (1.0 + lax.erf(y))

    y = jnp.dot(y.astype(w2_ref.dtype), w2_ref[...],
                preferred_element_type=jnp.float32) + b2_ref[...]
    y = y * (1.0 + lax.erf(y))

    y = jnp.dot(y.astype(w3_ref.dtype), w3_ref[...],
                preferred_element_type=jnp.float32) + b3_ref[...]

    # Residual: re-read the (already VMEM-resident) input tile here instead of
    # holding it live across the three matmuls (lower vreg pressure).
    o_ref[...] = (s_ref[...].astype(jnp.float32) + y).astype(o_ref.dtype)


def prepare_params(params, compute_dtype=jnp.bfloat16):
    """One-time parameter prep (do NOT call per forward pass).

    * Transpose PyTorch (out, in) weights to (in, out) so the kernel does x @ W.
    * Fold the erf-GELU scales into the weight chain so the kernel computes
      y*(1+erf(y)) per layer and stays algebraically exact:
          W1' = W1^T / sqrt(2)     b1' = b1 / sqrt(2)
          W2' = W2^T * 0.5         b2' = b2 / sqrt(2)
          W3' = W3^T / sqrt(2)     b3' = b3
    * Cast matmul weights to `compute_dtype` (bf16 default -> MXU fast path,
      halves weight DMA).  Biases stay f32 (added to f32 accumulators).
    """
    c = params["w1"].shape[0]
    f32 = jnp.float32
    inv = f32(_INV_SQRT2)
    return {
        "w1t": (params["w1"].T.astype(f32) * inv).astype(compute_dtype),
        "b1":  (params["b1"].astype(f32) * inv).reshape(1, c),
        "w2t": (params["w2"].T.astype(f32) * f32(0.5)).astype(compute_dtype),
        "b2":  (params["b2"].astype(f32) * inv).reshape(1, c),
        "w3t": (params["w3"].T.astype(f32) * inv).astype(compute_dtype),
        "b3":  params["b3"].astype(f32).reshape(1, c),
    }


def _vmem_physical_bytes():
    try:
        return int(pltpu.get_tpu_info().vmem_capacity_bytes)
    except Exception:
        return 64 << 20  # conservative fallback (v7x per-TensorCore size)


def _choose_row_tile(n, tm):
    """Pick the row-tile size: big streaming tile, multiple of 8, and at least
    2 grid steps whenever n allows (megacore sharding + pipelining)."""
    n8 = ((n + 7) // 8) * 8
    tm_eff = max(8, min((tm // 8) * 8, n8))
    if n8 >= 16:
        half = ((pl.cdiv(n8, 2) + 7) // 8) * 8
        tm_eff = min(tm_eff, half)
    return tm_eff


def structure_module_transition_layer(s, prepped, *, tm=2048):
    """s: (..., C) array.  prepped: output of prepare_params()."""
    c = s.shape[-1]
    lead_shape = s.shape[:-1]
    s2d = s.reshape(-1, c)
    n = s2d.shape[0]

    tm_eff = _choose_row_tile(n, tm)
    grid = (pl.cdiv(n, tm_eff),)  # partial last block: OOB writes are masked

    row_spec = pl.BlockSpec((tm_eff, c), lambda i: (i, 0))
    w_spec = pl.BlockSpec((c, c), lambda i: (0, 0))   # grid-invariant: fetched once
    b_spec = pl.BlockSpec((1, c), lambda i: (0, 0))   # grid-invariant: fetched once

    # Chip-aware scoped-VMEM request sized from actual usage (row tiles
    # double-buffered in+out, weights counted twice + slack), capped at 3/4 of
    # physical VMEM (<= 96 MiB) so it is safe on v7x's 64 MiB per core.
    in_bytes = tm_eff * c * jnp.dtype(s.dtype).itemsize
    w_bytes = 3 * c * c * jnp.dtype(prepped["w1t"].dtype).itemsize + 3 * c * 4
    needed = 4 * in_bytes + 2 * w_bytes + (6 << 20)
    cap = min((_vmem_physical_bytes() * 3) // 4, 96 << 20)
    vmem_limit = int(min(max(needed, 16 << 20), cap))

    out2d = pl.pallas_call(
        _transition_kernel,
        out_shape=jax.ShapeDtypeStruct((n, c), s.dtype),
        grid_spec=pltpu.PrefetchScalarGridSpec(
            num_scalar_prefetch=0,
            grid=grid,
            in_specs=[row_spec, w_spec, b_spec, w_spec, b_spec, w_spec, b_spec],
            out_specs=row_spec,
        ),
        compiler_params=pltpu.CompilerParams(
            dimension_semantics=("parallel",),
            vmem_limit_bytes=vmem_limit),
    )(s2d, prepped["w1t"], prepped["b1"], prepped["w2t"], prepped["b2"],
      prepped["w3t"], prepped["b3"])

    return out2d.reshape(*lead_shape, c)


def _init_params(key, c):
    """Deterministic synthetic init (UniFold uses 'relu' init for linear_1/2
    and zeros for linear_3; small random weights give a non-trivial check)."""
    k1, k2, k3, k4, k5, k6 = jax.random.split(key, 6)
    scale = 1.0 / jnp.sqrt(jnp.float32(c))
    return {
        "w1": jax.random.normal(k1, (c, c), jnp.float32) * scale,
        "b1": jax.random.normal(k2, (c,), jnp.float32) * 0.01,
        "w2": jax.random.normal(k3, (c, c), jnp.float32) * scale,
        "b2": jax.random.normal(k4, (c,), jnp.float32) * 0.01,
        "w3": jax.random.normal(k5, (c, c), jnp.float32) * scale,
        "b3": jax.random.normal(k6, (c,), jnp.float32) * 0.01,
    }


def _reference(s, params):
    x = s @ params["w1"].T + params["b1"]
    x = 0.5 * x * (1.0 + lax.erf(x / jnp.sqrt(2.0)))
    x = x @ params["w2"].T + params["b2"]
    x = 0.5 * x * (1.0 + lax.erf(x / jnp.sqrt(2.0)))
    x = x @ params["w3"].T + params["b3"]
    return s + x


if __name__ == "__main__":
    key = jax.random.PRNGKey(0)
    k_in, k_par = jax.random.split(key)

    batch, seq, c = 2, 64, 128  # small demo shapes; N_rows = 128, C = 128
    s = jax.random.normal(k_in, (batch, seq, c), jnp.float32)
    params = _init_params(k_par, c)
    ref = _reference(s, params)

    # f32-weight path: exact erf-GELU numerics vs the reference.
    prepped_f32 = prepare_params(params, compute_dtype=jnp.float32)
    out = jax.block_until_ready(structure_module_transition_layer(s, prepped_f32))
    assert out.shape == s.shape and out.dtype == s.dtype
    assert jnp.allclose(out, ref, atol=1e-4, rtol=1e-4), "f32 mismatch vs reference"

    # Non-tile-divisible row count: exercises the pad-free partial last block.
    s_odd = jax.random.normal(k_in, (3, 37, c), jnp.float32)
    out_odd = jax.block_until_ready(
        structure_module_transition_layer(s_odd, prepped_f32))
    assert jnp.allclose(out_odd, _reference(s_odd, params), atol=1e-4, rtol=1e-4)

    # bf16-weight MXU fast path (default prepare_params): looser tolerance.
    prepped_bf16 = prepare_params(params)  # compute_dtype=bfloat16
    out_bf = jax.block_until_ready(
        structure_module_transition_layer(s, prepped_bf16))
    assert jnp.allclose(out_bf, ref, atol=1e-1, rtol=1e-1), "bf16 path mismatch"

    print("KERNEL_OK")
</pallas_src>

<mosaic_0001>
module attributes {stable_mosaic.version = 11 : i64} {
  func.func @_transition_kernel(%arg0: i32, %arg1: memref<64x128xf32, #tpu.memory_space<vmem>>, %arg2: memref<128x128xf32, #tpu.memory_space<vmem>>, %arg3: memref<1x128xf32, #tpu.memory_space<vmem>>, %arg4: memref<128x128xf32, #tpu.memory_space<vmem>>, %arg5: memref<1x128xf32, #tpu.memory_space<vmem>>, %arg6: memref<128x128xf32, #tpu.memory_space<vmem>>, %arg7: memref<1x128xf32, #tpu.memory_space<vmem>>, %arg8: memref<64x128xf32, #tpu.memory_space<vmem>>) attributes {dimension_semantics = [#tpu.dimension_semantics<parallel>], iteration_bounds = array<i64: 2>, scalar_prefetch = 0 : i64, scratch_operands = 0 : i64, tpu.core_type = #tpu.core_type<tc>, window_params = [{transform_indices = @transform_0, window_bounds = array<i64: 64, 128>}, {pipeline_mode = #tpu.pipeline_mode<synchronous>, transform_indices = @transform_1, window_bounds = array<i64: 128, 128>}, {pipeline_mode = #tpu.pipeline_mode<synchronous>, transform_indices = @transform_2, window_bounds = array<i64: 1, 128>}, {pipeline_mode = #tpu.pipeline_mode<synchronous>, transform_indices = @transform_3, window_bounds = array<i64: 128, 128>}, {pipeline_mode = #tpu.pipeline_mode<synchronous>, transform_indices = @transform_4, window_bounds = array<i64: 1, 128>}, {pipeline_mode = #tpu.pipeline_mode<synchronous>, transform_indices = @transform_5, window_bounds = array<i64: 128, 128>}, {pipeline_mode = #tpu.pipeline_mode<synchronous>, transform_indices = @transform_6, window_bounds = array<i64: 1, 128>}, {transform_indices = @transform_7, window_bounds = array<i64: 64, 128>}]} {
    %c0 = arith.constant 0 : index
    %c0_0 = arith.constant 0 : index
    %0 = vector.load %arg1[%c0, %c0_0] : memref<64x128xf32, #tpu.memory_space<vmem>>, vector<64x128xf32>
    %c0_1 = arith.constant 0 : index
    %c0_2 = arith.constant 0 : index
    %1 = vector.load %arg2[%c0_1, %c0_2] : memref<128x128xf32, #tpu.memory_space<vmem>>, vector<128x128xf32>
    %cst = arith.constant dense<0.000000e+00> : vector<64x128xf32>
    %2 = tpu.matmul %0, %1, %cst {dimension_numbers = #tpu.dot_dimension_numbers<[1], [0], [0], [1], [0, 0, 1, 1], [], []>} : vector<64x128xf32>, vector<128x128xf32>, vector<64x128xf32> -> vector<64x128xf32>
    %c0_3 = arith.constant 0 : index
    %c0_4 = arith.constant 0 : index
    %3 = vector.load %arg3[%c0_3, %c0_4] : memref<1x128xf32, #tpu.memory_space<vmem>>, vector<1x128xf32>
    %4 = vector.broadcast %3 : vector<1x128xf32> to vector<64x128xf32>
    %5 = arith.addf %2, %4 : vector<64x128xf32>
    %6 = math.erf %5 : vector<64x128xf32>
    %cst_5 = arith.constant 1.000000e+00 : f32
    %7 = vector.broadcast %cst_5 : f32 to vector<64x128xf32>
    %8 = arith.addf %7, %6 : vector<64x128xf32>
    %9 = arith.mulf %5, %8 : vector<64x128xf32>
    %c0_6 = arith.constant 0 : index
    %c0_7 = arith.constant 0 : index
    %10 = vector.load %arg4[%c0_6, %c0_7] : memref<128x128xf32, #tpu.memory_space<vmem>>, vector<128x128xf32>
    %cst_8 = arith.constant dense<0.000000e+00> : vector<64x128xf32>
    %11 = tpu.matmul %9, %10, %cst_8 {dimension_numbers = #tpu.dot_dimension_numbers<[1], [0], [0], [1], [0, 0, 1, 1], [], []>} : vector<64x128xf32>, vector<128x128xf32>, vector<64x128xf32> -> vector<64x128xf32>
    %c0_9 = arith.constant 0 : index
    %c0_10 = arith.constant 0 : index
    %12 = vector.load %arg5[%c0_9, %c0_10] : memref<1x128xf32, #tpu.memory_space<vmem>>, vector<1x128xf32>
    %13 = vector.broadcast %12 : vector<1x128xf32> to vector<64x128xf32>
    %14 = arith.addf %11, %13 : vector<64x128xf32>
    %15 = math.erf %14 : vector<64x128xf32>
    %cst_11 = arith.constant 1.000000e+00 : f32
    %16 = vector.broadcast %cst_11 : f32 to vector<64x128xf32>
    %17 = arith.addf %16, %15 : vector<64x128xf32>
    %18 = arith.mulf %14, %17 : vector<64x128xf32>
    %c0_12 = arith.constant 0 : index
    %c0_13 = arith.constant 0 : index
    %19 = vector.load %arg6[%c0_12, %c0_13] : memref<128x128xf32, #tpu.memory_space<vmem>>, vector<128x128xf32>
    %cst_14 = arith.constant dense<0.000000e+00> : vector<64x128xf32>
    %20 = tpu.matmul %18, %19, %cst_14 {dimension_numbers = #tpu.dot_dimension_numbers<[1], [0], [0], [1], [0, 0, 1, 1], [], []>} : vector<64x128xf32>, vector<128x128xf32>, vector<64x128xf32> -> vector<64x128xf32>
    %c0_15 = arith.constant 0 : index
    %c0_16 = arith.constant 0 : index
    %21 = vector.load %arg7[%c0_15, %c0_16] : memref<1x128xf32, #tpu.memory_space<vmem>>, vector<1x128xf32>
    %22 = vector.broadcast %21 : vector<1x128xf32> to vector<64x128xf32>
    %23 = arith.addf %20, %22 : vector<64x128xf32>
    %c0_17 = arith.constant 0 : index
    %c0_18 = arith.constant 0 : index
    %24 = vector.load %arg1[%c0_17, %c0_18] : memref<64x128xf32, #tpu.memory_space<vmem>>, vector<64x128xf32>
    %25 = arith.addf %24, %23 : vector<64x128xf32>
    %c0_19 = arith.constant 0 : index
    %c0_20 = arith.constant 0 : index
    %26 = vector.load %arg8[%c0_19, %c0_20] : memref<64x128xf32, #tpu.memory_space<vmem>>, vector<64x128xf32>
    tpu.vector_store %arg8[%c0_19, %c0_20], %25 {strides = array<i32>} : memref<64x128xf32, #tpu.memory_space<vmem>>, vector<64x128xf32>,
    return
  }
  func.func @transform_0(%arg0: i32) -> (i32, i32) {
    %c0_i32 = arith.constant 0 : i32
    %c0_i32_0 = arith.constant 0 : i32
    return %arg0, %c0_i32 : i32, i32
  }
  func.func @transform_1(%arg0: i32) -> (i32, i32) {
    %c0_i32 = arith.constant 0 : i32
    %c0_i32_0 = arith.constant 0 : i32
    %c0_i32_1 = arith.constant 0 : i32
    return %c0_i32, %c0_i32_0 : i32, i32
  }
  func.func @transform_2(%arg0: i32) -> (i32, i32) {
    %c0_i32 = arith.constant 0 : i32
    %c0_i32_0 = arith.constant 0 : i32
    %c0_i32_1 = arith.constant 0 : i32
    return %c0_i32, %c0_i32_0 : i32, i32
  }
  func.func @transform_3(%arg0: i32) -> (i32, i32) {
    %c0_i32 = arith.constant 0 : i32
    %c0_i32_0 = arith.constant 0 : i32
    %c0_i32_1 = arith.constant 0 : i32
    return %c0_i32, %c0_i32_0 : i32, i32
  }
  func.func @transform_4(%arg0: i32) -> (i32, i32) {
    %c0_i32 = arith.constant 0 : i32
    %c0_i32_0 = arith.constant 0 : i32
    %c0_i32_1 = arith.constant 0 : i32
    return %c0_i32, %c0_i32_0 : i32, i32
  }
  func.func @transform_5(%arg0: i32) -> (i32, i32) {
    %c0_i32 = arith.constant 0 : i32
    %c0_i32_0 = arith.constant 0 : i32
    %c0_i32_1 = arith.constant 0 : i32
    return %c0_i32, %c0_i32_0 : i32, i32
  }
  func.func @transform_6(%arg0: i32) -> (i32, i32) {
    %c0_i32 = arith.constant 0 : i32
    %c0_i32_0 = arith.constant 0 : i32
    %c0_i32_1 = arith.constant 0 : i32
    return %c0_i32, %c0_i32_0 : i32, i32
  }
  func.func @transform_7(%arg0: i32) -> (i32, i32) {
    %c0_i32 = arith.constant 0 : i32
    %c0_i32_0 = arith.constant 0 : i32
    return %arg0, %c0_i32 : i32, i32
  }
}

</mosaic_0001>

<bundles_post_ra>
// kernel: tpu_custom_call.1
= control target key start
LH: loop header
LB: loop body
LE: loop exit
PB: predicated region body
PF: predicated region fallthrough
CT: control target
= control target key end

     0   :  { %12 = vsyncpa [#allocation3], 0  ;;  %s1934_s0 = inlined_call_operand.hbm [shape: f32[128,128], index: 0, kind: input, shape index: {}]   ;;  %s1935_s1 = inlined_call_operand.hbm [shape: f32[128,128], index: 1, kind: input, shape index: {}]   ;;  %s1936_s2 = inlined_call_operand.vmem [shape: f32[1,128], index: 2, kind: input, shape index: {}]   ;;  %s1937_s3 = inlined_call_operand.hbm [shape: f32[128,128], index: 3, kind: input, shape index: {}]   ;;  %s1938_s4 = inlined_call_operand.vmem [shape: f32[1,128], index: 4, kind: input, shape index: {}]   ;;  %s1939_s5 = inlined_call_operand.hbm [shape: f32[128,128], index: 5, kind: input, shape index: {}]   ;;  %s1940_s6 = inlined_call_operand.vmem [shape: f32[1,128], index: 6, kind: input, shape index: {}]   ;;  %s1941_s7 = inlined_call_operand.hbm [shape: f32[128,128], index: 7, kind: output, shape index: {}]  }
   0x1   :  { %14 = vsyncpa [#allocation3 + $0x1], 0 }
   0x2   :  { %15 = vsyncpa [#allocation6], 0 }
   0x3   :  { %16 = vsyncpa [#allocation9], 0 }
   0x4   :  { %17 = vsyncpa [#allocation4], 0 }
   0x5   :  { %19 = vsyncpa [#allocation4 + $0x1], 0  ;;  %s1608_s24 = smov 0   ;;  %s1610_s25 = smov 0  }
   0x6   :  { %s1612_s26 = smov 0   ;;  %s1614_s27 = smov 0  }
   0x7 LB: > { %s1629_s28 = sadd.s32 4294967295, %s1557_s27   ;;  %s915_s29 = sadd.s32 4294967294, %s1557_s27   ;;  %s1557_s27 = sphi %s1614_s27, %s1967_s27   ;;  %s1553_s26 = sphi %s1612_s26, %s1966_s26   ;;  %s1549_s25 = sphi %s1610_s25, %s1965_s25   ;;  %s1545_s24 = sphi %s1608_s24, %s1964_s24  }
   0x8   : > { %p45_p0 = scmp.ne.s32.totalorder %s1549_s25, %s1545_s24  ;;  %p1942_p1 = scmp.eq.s32.totalorder %s1629_s28, 0 }
   0x9   : > { %p201_p3 = scmp.eq.s32.totalorder %s915_s29, 1  ;;  %p916_p5 = scmp.ge.s32.totalorder %s1557_s27, 1 }
   0xa   : > { %p1638_p4 = por %p1942_p1, %p45_p0  ;;  %p208_p7 = scmp.lt.s32.totalorder %s1557_s27, 3 }
   0xb   : > { %p1643_p6 = por %p201_p3, %p45_p0  ;;  %s1559_s10 = smov [#allocation5]  }
   0xc   : > { %s1946_s30 = scalar_select %p1638_p4, 1, 0 }
   0xd   : > { %s1947_s8 = scalar_select %p1643_p6, 1, 0 }
   0xe   : > { %p1648_p8 = pnand %p916_p5, %p208_p7  ;;  %s220_s11 = sshll.u32 %s1559_s10, 4  ;;  %s1652_s11 = int_to_ptr.vmem [resolvable:$true] %s220_s11 }
   0xf   : > { %1948 = sst [smem:[#allocation15_spill]] %s1947_s8  ;;  %s1560_s13 = smov [#allocation7]  }
  0x10   : > { %s1949_s9 = scalar_select %p1648_p8, 1, 0 }
  0x11   : > { %p1272_p9 = pneg %p1648_p8  ;;  %s236_s14 = sshll.u32 %s1560_s13, 4  ;;  %s1663_s14 = int_to_ptr.vmem [resolvable:$true] %s236_s14 }
  0x12   : > { %s1561_s15 = smov [#allocation8]   ;;  %s1369_s19 = scalar_lea.hbm %s1935_s1, 2048 }
  0x13   : > { %p1659_p11 = pnand %p1272_p9, %p1942_p1  ;;  %s1665_s16 = sshll.u32 %s1561_s15, 4  ;;  %s253_s16 = int_to_ptr.vmem [resolvable:$true] %s1665_s16 }
  0x14   : > { %p1370_p12 = scmp.ne.s32.totalorder %s1935_s1, %s1369_s19  ;;  %p1376_p5 = scmp.lt.u32.totalorder %s1369_s19, %s1935_s1 }
  0x15   : > { %p1675_p13 = pneg %p1659_p11 }
  0x17   : > { %p1372_p0 = pnand %p1675_p13, %p1370_p12 }
  0x19   : > { %p1373_p3 = pneg %p1372_p0 }
  0x1b   : > { %p1378_p7 = pnand %p1376_p5, %p1373_p3 }
  0x1d   : > { %1381 = shalt.err (!%p1378_p7)
}
  0x1e   : > { %s1382_s10 = scalar_lea.vmem %s1652_s11, 2048  ;;  %p1390_p2 = scmp.lt.s32.totalorder %s1652_s11, %s1652_s11 }
  0x1f   : > { %p1383_p9 = scmp.ne.s32.totalorder %s1652_s11, %s1382_s10  ;;  %p1391_p6 = scmp.lt.s32.totalorder %s1382_s10, %s1382_s10 }
  0x21   : > { %p1385_p10 = pnand %p1383_p9, %p1675_p13  ;;  %p1392_p12 = por %p1391_p6, %p1390_p2 }
  0x23   : > { %p1386_p1 = pneg %p1385_p10 }
  0x25   : > { %p1393_p0 = pnand %p1392_p12, %p1386_p1 }
  0x27   : > { %1396 = shalt.err (!%p1393_p0)
}
  0x28   : > { %s1562_s13 = smov 128   ;;  %s1563_s15 = smov 8  }
  0x29   : > { %1275 = dma.hbm_to_vmem [thread:$0]  (!%p1659_p11), %s1935_s1, 2048, %s1652_s11, [#allocation6], %s1562_s13, %s1562_s13, %s1563_s15  }
  0x2a   : > { %s1397_s21 = scalar_lea.hbm %s1937_s3, 2048 }
  0x2b   : > { %p1398_p1 = scmp.ne.s32.totalorder %s1937_s3, %s1397_s21  ;;  %p1404_p10 = scmp.lt.u32.totalorder %s1397_s21, %s1937_s3 }
  0x2d   : > { %p1400_p2 = pnand %p1398_p1, %p1675_p13 }
  0x2f   : > { %p1401_p6 = pneg %p1400_p2 }
  0x31   : > { %p1406_p3 = pnand %p1404_p10, %p1401_p6 }
  0x33   : > { %1409 = shalt.err (!%p1406_p3)
}
  0x34   : > { %s1410_s11 = scalar_lea.vmem %s1663_s14, 2048  ;;  %p1418_p12 = scmp.lt.s32.totalorder %s1663_s14, %s1663_s14 }
  0x35   : > { %p1411_p5 = scmp.ne.s32.totalorder %s1663_s14, %s1410_s11  ;;  %p1419_p0 = scmp.lt.s32.totalorder %s1410_s11, %s1410_s11 }
  0x37   : > { %p1413_p7 = pnand %p1411_p5, %p1675_p13  ;;  %p1420_p1 = por %p1419_p0, %p1418_p12 }
  0x39   : > { %p1414_p9 = pneg %p1413_p7 }
  0x3b   : > { %p1421_p2 = pnand %p1420_p1, %p1414_p9 }
  0x3d   : > { %1424 = shalt.err (!%p1421_p2)
}
  0x3e   : > { %1278 = dma.hbm_to_vmem [thread:$0]  (!%p1659_p11), %s1937_s3, 2048, %s1663_s14, [#allocation6], %s1562_s13, %s1562_s13, %s1563_s15  }
  0x3f   : > { %s1425_s20 = scalar_lea.hbm %s1939_s5, 2048 }
  0x40   : > { %p1426_p6 = scmp.ne.s32.totalorder %s1939_s5, %s1425_s20  ;;  %p1432_p5 = scmp.lt.u32.totalorder %s1425_s20, %s1939_s5 }
  0x42   : > { %p1428_p10 = pnand %p1426_p6, %p1675_p13 }
  0x44   : > { %p1429_p3 = pneg %p1428_p10 }
  0x46   : > { %p1434_p7 = pnand %p1432_p5, %p1429_p3 }
  0x48   : > { %1437 = shalt.err (!%p1434_p7)
}
  0x49   : > { %s1438_s11 = scalar_lea.vmem %s253_s16, 2048  ;;  %p1446_p1 = scmp.lt.s32.totalorder %s253_s16, %s253_s16 }
  0x4a   : > { %p1439_p9 = scmp.ne.s32.totalorder %s253_s16, %s1438_s11  ;;  %p1447_p2 = scmp.lt.s32.totalorder %s1438_s11, %s1438_s11 }
  0x4c   : > { %p1441_p12 = pnand %p1439_p9, %p1675_p13  ;;  %p1448_p4 = por %p1447_p2, %p1446_p1 }
  0x4e   : > { %p1442_p0 = pneg %p1441_p12 }
  0x50   : > { %p1449_p8 = pnand %p1448_p4, %p1442_p0 }
  0x52   : > { %1452 = shalt.err (!%p1449_p8)
}
  0x53   : > { %1281 = dma.hbm_to_vmem [thread:$0]  (!%p1659_p11), %s1939_s5, 2048, %s253_s16, [#allocation9], %s1562_s13, %s1562_s13, %s1563_s15  }
  0x54   : > { %s1748_s22 = sadd.s32 1, %s1557_s27   ;;  %s32_s17 = sadd.s32 1, %s1553_s26 }
  0x55   : > { %s29_s12 = ssub.s32 %s1557_s27, %s1748_s22  ;;  %p39_p8 = scmp.ne.s32.totalorder %s1553_s26, %s1549_s25 }
  0x56   : > { %p30_p4 = scmp.eq.s32.totalorder %s29_s12, 0  ;;  %p40_p13 = scmp.eq.s32.totalorder %s1557_s27, 0 }
  0x57   : > { %p1293_p6 = scmp.lt.s32.totalorder %s1557_s27, 2  ;;  %p1952_p3 = scmp.eq.s32.totalorder %s1629_s28, 1 }
  0x58   : > { %s1758_s18 = scalar_select %p30_p4, %s1553_s26, %s32_s17  }
  0x59   : > { %p41_p10 = por %p40_p13, %p39_p8  ;;  %p1762_p5 = por %p1952_p3, %p39_p8 }
  0x5a   : > { %s269_s20 = sand.u32 1, %s1553_s26   ;;  %s938_s21 = sshll.u32 %s1557_s27, 10 }
  0x5b   : > { %s921_s16 = sshll.u32 %s269_s20, 6  ;;  %s1771_s10 = scalar_lea.hbm %s1934_s0, %s938_s21 }
  0x5c   : > { %s273_s11 = scalar_lea.vmem [#allocation2], %s921_s16  ;;  %p1773_p11 = pnand %p1293_p6, %p41_p10 }
  0x5d   : > { %s280_s14 = sshll.u32 %s273_s11, 4  ;;  %s1779_s12 = scalar_lea.sflag [#allocation3], %s269_s20  ;;  %s1777_s14 = int_to_ptr.vmem [resolvable:$true] %s280_s14 }
  0x5e   : > { %s1453_s17 = scalar_lea.hbm %s1771_s10, 1024  ;;  %p1455_p9 = pneg %p1773_p11 }
  0x5f   : > { %p1454_p7 = scmp.ne.s32.totalorder %s1771_s10, %s1453_s17  ;;  %s1458_s23 = scalar_lea.hbm %s1934_s0, 2048 }
  0x60   : > { %p1459_p1 = scmp.lt.u32.totalorder %s1771_s10, %s1934_s0  ;;  %p1460_p2 = scmp.lt.u32.totalorder %s1458_s23, %s1453_s17 }
  0x61   : > { %p1456_p12 = pnand %p1455_p9, %p1454_p7  ;;  %p1462_p8 = scmp.lt.u32.totalorder %s1453_s17, %s1771_s10 }
  0x62   : > { %p1461_p4 = por %p1460_p2, %p1459_p1 }
  0x63   : > { %p1457_p0 = pneg %p1456_p12 }
  0x64   : > { %p1463_p13 = por %p1462_p8, %p1461_p4 }
  0x66   : > { %p1464_p6 = pnand %p1463_p13, %p1457_p0 }
  0x68   : > { %1467 = shalt.err (!%p1464_p6)
}
  0x69   : > { %s1468_s20 = scalar_lea.vmem %s1777_s14, 1024  ;;  %s1564_s21 = smov [#allocation2]  }
  0x6a   : > { %p1469_p10 = scmp.ne.s32.totalorder %s1777_s14, %s1468_s20  ;;  %s1473_s16 = sshll.u32 %s1564_s21, 4  ;;  %s1474_s16 = int_to_ptr.vmem [resolvable:$false] %s1473_s16 }
  0x6b   : > { %s1475_s29 = scalar_lea.vmem %s1474_s16, 2048  ;;  %p1476_p12 = scmp.lt.s32.totalorder %s1777_s14, %s1474_s16 }
  0x6c   : > { %p1471_p3 = pnand %p1469_p10, %p1455_p9  ;;  %p1477_p1 = scmp.lt.s32.totalorder %s1475_s29, %s1468_s20 }
  0x6e   : > { %p1472_p7 = pneg %p1471_p3  ;;  %p1478_p2 = por %p1477_p1, %p1476_p12 }
  0x70   : > { %p1479_p4 = pnand %p1478_p2, %p1472_p7 }
  0x72   : > { %1482 = shalt.err (!%p1479_p4)
}
  0x73   : > { %1285 = dma.hbm_to_vmem [thread:$0]  (!%p1773_p11), %s1771_s10, 1024, %s1777_s14, %s1779_s12, %s1562_s13, %s1562_s13, %s1563_s15  }
  0x74   : > { %p1955_p9 = scmp.ne.s32.totalorder %s1949_s9, 0 }
  0x75   : > { %s1813_s17 = sand.u32 (!%p1955_p9), 1, %s1549_s25   ;;  %p1956_p0 = scmp.ne.s32.totalorder (!%p1955_p9), %s1946_s30, 0 }
  0x76   : > { %292 = sbr.rel (%p1955_p9) target bundleno = 874 (0x36a), region = 48  ;;  %s925_s23 = sshll.u32 (!%p1955_p9), %s1813_s17, 6 }
  0x77   : > { %s295_s11 = scalar_lea.sflag (!%p1955_p9), [#allocation3], %s1813_s17  ;;  %s1819_s8 = scalar_lea.vmem (!%p1955_p9), [#allocation2], %s925_s23 }
  0x7d   : > { %1528 = dma.done.wait (%p1956_p0), %s295_s11, 1024  }
  0x7e   : > { %1530 = vsyncadd (%p1956_p0), %s295_s11, 4294966272  ;;  %p1957_p11 = scmp.eq.s32.totalorder %s1629_s28, 0 }
  0x80   : > { %1532 = dma.done.wait (%p1957_p11), [#allocation6], 4096   ;;  %p1958_p8 = pmov %p1957_p11 }
  0x82   : > { %1534 = vsyncadd (%p1958_p8), [#allocation6], 4294963200  ;;  %p1959_p13 = pmov %p1958_p8 }
  0x83   : > { %p1960_p6 = pmov %p1958_p8 }
  0x84   : > { %1536 = dma.done.wait (%p1959_p13), [#allocation9], 2048  }
  0x85   : > { %1538 = vsyncadd (%p1960_p6), [#allocation9], 4294965248  ;;  %v351_v0 = vld [vmem:[#allocation5] sm:$0xff]  ;;  %v352_v1 = vld [vmem:[#allocation5 + $0x8] sm:$0xff]  ;;  %s340_s12 = scalar_lea.vmem [#allocation10], %s925_s23  ;;  %s939_s21 = sshll.u32 %s1629_s28, 10 }
  0x86   : > { %v353_v2 = vld [vmem:[#allocation5 + $0x10] sm:$0xff]  ;;  %v1144_v3 = vpack.c.bf16 %v352_v1, %v351_v0  ;;  %v354_v4 = vld [vmem:[#allocation5 + $0x18] sm:$0xff]  ;;  %v355_v6 = vld [vmem:[#allocation5 + $0x20] sm:$0xff]  ;;  %s813_s20 = sshll.u32 %s340_s12, 4  ;;  %s1889_s23 = scalar_lea.hbm %s1941_s7, %s939_s21  ;;  %s1883_s20 = int_to_ptr.vmem [resolvable:$true] %s813_s20 }
  0x87   : > { %v1148_v5 = vpack.c.bf16 %v354_v4, %v353_v2  ;;  %v356_v7 = vld [vmem:[#allocation5 + $0x28] sm:$0xff]  ;;  %v1834_v9 = vld [vmem:[%s1819_s8] sm:$0xff]  ;;  %v357_v10 = vld [vmem:[#allocation5 + $0x30] sm:$0xff]  ;;  %s800_s28 = scalar_lea.sflag [#allocation4], %s1813_s17  ;;  %s1483_s11 = scalar_lea.vmem %s1883_s20, 1024 }
  0x88   : > { %1145 = vmatprep.subr.bf16.mxu0 %v1144_v3  ;;  %v1152_v8 = vpack.c.bf16 %v356_v7, %v355_v6  ;;  %v358_v11 = vld [vmem:[#allocation5 + $0x38] sm:$0xff]  ;;  %1044 = vmatprep.mubr.f32.mxu0 %v1834_v9  ;;  %v503_v12 = vld [vmem:[#allocation7] sm:$0xff]  ;;  %v504_v13 = vld [vmem:[#allocation7 + $0x8] sm:$0xff]  ;;  %p1484_p10 = scmp.ne.s32.totalorder %s1883_s20, %s1483_s11 }
  0x89   : > { %1147 = vmatpush3.bf16.msra.mxu0 %v1144_v3  ;;  %v505_v14 = vld [vmem:[#allocation7 + $0x10] sm:$0xff]  ;;  %v1156_v15 = vpack.c.bf16 %v358_v11, %v357_v10  ;;  %v359_v16 = vld [vmem:[#allocation5 + $0x40] sm:$0xff]  ;;  %v1176_v17 = vpack.c.bf16 %v504_v13, %v503_v12  ;;  %v506_v18 = vld [vmem:[#allocation7 + $0x18] sm:$0xff] }
  0x8a   : > { %1149 = vmatprep.subr.bf16.mxu0 %v1148_v5  ;;  %v360_v19 = vld [vmem:[#allocation5 + $0x48] sm:$0xff]  ;;  %v1180_v20 = vpack.c.bf16 %v506_v18, %v505_v14  ;;  %v507_v21 = vld [vmem:[#allocation7 + $0x20] sm:$0xff]  ;;  %v361_v25 = vld [vmem:[#allocation5 + $0x50] sm:$0xff]  ;;  %p1485_p3 = pnand %p1484_p10, %p1762_p5 }
  0x8b   : > { %v508_v22 = vld [vmem:[#allocation7 + $0x28] sm:$0xff]  ;;  %1177 = vmatprep.subr.bf16.mxu1 %v1176_v17  ;;  %v1160_v23 = vpack.c.bf16 %v360_v19, %v359_v16  ;;  %v362_v26 = vld [vmem:[#allocation5 + $0x58] sm:$0xff]  ;;  %v363_v28 = vld [vmem:[#allocation5 + $0x60] sm:$0xff] }
  0x8c   : > { %1179 = vmatpush3.bf16.msra.mxu1 %v1176_v17  ;;  %v1184_v24 = vpack.c.bf16 %v508_v22, %v507_v21  ;;  %v1164_v27 = vpack.c.bf16 %v362_v26, %v361_v25  ;;  %v364_v29 = vld [vmem:[#allocation5 + $0x68] sm:$0xff]  ;;  %v365_v31 = vld [vmem:[#allocation5 + $0x70] sm:$0xff]  ;;  %v366_v32 = vld [vmem:[#allocation5 + $0x78] sm:$0xff]  ;;  %p1486_p7 = pneg %p1485_p3 }
  0x8d   : > { %1151 = vmatpush3.bf16.msra.mxu0 %v1148_v5  ;;  %1181 = vmatprep.subr.bf16.mxu1 %v1180_v20  ;;  %v1168_v30 = vpack.c.bf16 %v364_v29, %v363_v28  ;;  %v1172_v33 = vpack.c.bf16 %v366_v32, %v365_v31  ;;  %v1838_v34 = vld [vmem:[%s1819_s8 + $0x8] sm:$0xff]  ;;  %v1841_v35 = vld [vmem:[%s1819_s8 + $0x10] sm:$0xff]  ;;  %v1846_v36 = vld [vmem:[%s1819_s8 + $0x18] sm:$0xff] }
  0x8e   : > { %1153 = vmatprep.subr.bf16.mxu0 %v1152_v8  ;;  %v1849_v37 = vld [vmem:[%s1819_s8 + $0x20] sm:$0xff]  ;;  %v1854_v38 = vld [vmem:[%s1819_s8 + $0x28] sm:$0xff]  ;;  %v1857_v39 = vld [vmem:[%s1819_s8 + $0x30] sm:$0xff] }
  0x8f   : > { %v1862_v40 = vld [vmem:[%s1819_s8 + $0x38] sm:$0xff]  ;;  %v509_v41 = vld [vmem:[#allocation7 + $0x30] sm:$0xff]  ;;  %v511_v44 = vld [vmem:[#allocation7 + $0x40] sm:$0xff]  ;;  %s1565_s8 = smov [#allocation10]  }
  0x90   : > { %1183 = vmatpush3.bf16.msra.mxu1 %v1180_v20  ;;  %v510_v42 = vld [vmem:[#allocation7 + $0x38] sm:$0xff]  ;;  %v512_v45 = vld [vmem:[#allocation7 + $0x48] sm:$0xff]  ;;  %v513_v47 = vld [vmem:[#allocation7 + $0x50] sm:$0xff]  ;;  %s1487_s30 = sshll.u32 %s1565_s8, 4  ;;  %s1488_s30 = int_to_ptr.vmem [resolvable:$false] %s1487_s30 }
  0x91   : > { %1155 = vmatpush3.bf16.msra.mxu0 %v1152_v8  ;;  %1185 = vmatprep.subr.bf16.mxu1 %v1184_v24  ;;  %v1188_v43 = vpack.c.bf16 %v510_v42, %v509_v41  ;;  %v1192_v46 = vpack.c.bf16 %v512_v45, %v511_v44  ;;  %v514_v48 = vld [vmem:[#allocation7 + $0x58] sm:$0xff]  ;;  %v515_v50 = vld [vmem:[#allocation7 + $0x60] sm:$0xff]  ;;  %v516_v51 = vld [vmem:[#allocation7 + $0x68] sm:$0xff]  ;;  %s1489_s9 = scalar_lea.vmem %s1488_s30, 2048  ;;  %p1490_p12 = scmp.lt.s32.totalorder %s1883_s20, %s1488_s30 }
  0x92   : > { %1157 = vmatprep.subr.bf16.mxu0 %v1156_v15  ;;  %v1196_v49 = vpack.c.bf16 %v514_v48, %v513_v47  ;;  %v1200_v52 = vpack.c.bf16 %v516_v51, %v515_v50  ;;  %v517_v53 = vld [vmem:[#allocation7 + $0x70] sm:$0xff]  ;;  %v518_v54 = vld [vmem:[#allocation7 + $0x78] sm:$0xff]  ;;  %v655_v56 = vld [vmem:[#allocation8] sm:$0xff]  ;;  %p1491_p1 = scmp.lt.s32.totalorder %s1489_s9, %s1483_s11 }
  0x93   : > { %v1204_v55 = vpack.c.bf16 %v518_v54, %v517_v53  ;;  %v656_v57 = vld [vmem:[#allocation8 + $0x8] sm:$0xff]  ;;  %v657_v58 = vld [vmem:[#allocation8 + $0x10] sm:$0xff]  ;;  %v658_v60 = vld [vmem:[#allocation8 + $0x18] sm:$0xff] }
  0x94   : > { %1187 = vmatpush3.bf16.msra.mxu1 %v1184_v24  ;;  %v1208_v59 = vpack.c.bf16 %v656_v57, %v655_v56  ;;  %v1212_v61 = vpack.c.bf16 %v658_v60, %v657_v58  ;;  %v659_v62 = vld [vmem:[#allocation8 + $0x20] sm:$0xff]  ;;  %v660_v63 = vld [vmem:[#allocation8 + $0x28] sm:$0xff]  ;;  %v661_v50 = vld [vmem:[#allocation8 + $0x30] sm:$0xff]  ;;  %p1492_p2 = por %p1491_p1, %p1490_p12 }
  0x95   : > { %1159 = vmatpush3.bf16.msra.mxu0 %v1156_v15  ;;  %1189 = vmatprep.subr.bf16.mxu1 %v1188_v43  ;;  %v1216_v0 = vpack.c.bf16 %v660_v63, %v659_v62  ;;  %v930_v1 = vld [vmem:[%s1936_s2] ss:$0 sm:$0xff]  ;;  %v662_v51 = vld [vmem:[#allocation8 + $0x38] sm:$0xff]  ;;  %v664_v54 = vld [vmem:[#allocation8 + $0x48] sm:$0xff] }
  0x96   : > { %1161 = vmatprep.subr.bf16.mxu0 %v1160_v23  ;;  %v663_v53 = vld [vmem:[#allocation8 + $0x40] sm:$0xff]  ;;  %v665_v56 = vld [vmem:[#allocation8 + $0x50] sm:$0xff]  ;;  %v666_v57 = vld [vmem:[#allocation8 + $0x58] sm:$0xff]  ;;  %p1493_p4 = pnand %p1492_p2, %p1486_p7 }
  0x97   : > { %v1228_v58 = vpack.c.bf16 %v666_v57, %v665_v56  ;;  %v668_v60 = vld [vmem:[#allocation8 + $0x68] sm:$0xff]  ;;  %v669_v62 = vld [vmem:[#allocation8 + $0x70] sm:$0xff]  ;;  %v670_v63 = vld [vmem:[#allocation8 + $0x78] sm:$0xff] }
  0x98   : > { %1191 = vmatpush3.bf16.msra.mxu1 %v1188_v43 }
  0x99   : > { %1163 = vmatpush3.bf16.msra.mxu0 %v1160_v23  ;;  %1193 = vmatprep.subr.bf16.mxu1 %v1192_v46 }
  0x9a   : > { %1165 = vmatprep.subr.bf16.mxu0 %v1164_v27 }
  0x9c   : > { %1195 = vmatpush3.bf16.msra.mxu1 %v1192_v46 }
  0x9d   : > { %1167 = vmatpush3.bf16.msra.mxu0 %v1164_v27  ;;  %1197 = vmatprep.subr.bf16.mxu1 %v1196_v49 }
  0x9e   : > { %1169 = vmatprep.subr.bf16.mxu0 %v1168_v30 }
  0xa0   : > { %1199 = vmatpush3.bf16.msra.mxu1 %v1196_v49 }
  0xa1   : > { %1171 = vmatpush3.bf16.msra.mxu0 %v1168_v30  ;;  %1201 = vmatprep.subr.bf16.mxu1 %v1200_v52 }
  0xa2   : > { %1173 = vmatprep.subr.bf16.mxu0 %v1172_v33 }
  0xa4   : > { %1203 = vmatpush3.bf16.msra.mxu1 %v1200_v52  ;;  %v1220_v52 = vpack.c.bf16 %v662_v51, %v661_v50  ;;  %v932_v50 = vld [vmem:[%s1940_s6] ss:$0 sm:$0xff] }
  0xa5   : > { %1175 = vmatpush3.bf16.msra.mxu0 %v1172_v33  ;;  %1205 = vmatprep.subr.bf16.mxu1 %v1204_v55 }
  0xa6   : > { %1209 = vmatprep.subr.bf16.mxu0 %v1208_v59 }
  0xa8   : > { %1045 = vmatmul.mubr.f32.vlgmr.msra.gmra.mrb[0].mxu0 %v1838_v34  ;;  %1207 = vmatpush3.bf16.msra.mxu1 %v1204_v55  ;;  %v1224_v55 = vpack.c.bf16 %v664_v54, %v663_v53 }
  0xa9   : > { %1047 = vmatprep.mubr.f32.mxu0 %v1841_v35  ;;  %1240 = vmatprep.subr.bf16.mxu1 %v1208_v59 }
  0xaa   : > { %1211 = vmatpush3.bf16.msra.mxu0 %v1208_v59 }
  0xab   : > { %1213 = vmatprep.subr.bf16.mxu0 %v1212_v61 }
  0xac   : > { %1048 = vmatmul.mubr.f32.gmra.mrb[2].mxu0 %v1846_v36 }
  0xad   : > { %1050 = vmatprep.mubr.f32.mxu0 %v1849_v37 }
  0xae   : > { %1215 = vmatpush3.bf16.msra.mxu0 %v1212_v61 }
  0xaf   : > { %1217 = vmatprep.subr.bf16.mxu0 %v1216_v0 }
  0xb0   : > { %1051 = vmatmul.mubr.f32.gmra.mrb[4].mxu0 %v1854_v38 }
  0xb1   : > { %1053 = vmatprep.mubr.f32.mxu0 %v1857_v39 }
  0xb2   : > { %1219 = vmatpush3.bf16.msra.mxu0 %v1216_v0 }
  0xb3   : > { %1221 = vmatprep.subr.bf16.mxu0 %v1220_v52 }
  0xb4   : > { %1054 = vmatmul.mubr.f32.gmra.mrb[6].mxu0 %v1862_v40 }
  0xb6   : > { %1223 = vmatpush3.bf16.msra.mxu0 %v1220_v52 }
  0xb7   : > { %1225 = vmatprep.subr.bf16.mxu0 %v1224_v55 }
  0xba   : > { %1227 = vmatpush3.bf16.msra.mxu0 %v1224_v55 }
  0xbb   : > { %1229 = vmatprep.subr.bf16.mxu0 %v1228_v58 }
  0xbe   : > { %1231 = vmatpush3.bf16.msra.mxu0 %v1228_v58 }
 0x17b   : > { %v1046_v2 = vpop.f32.mrb[0].mxu0 }
 0x17c   : > { %v446_v3 = vadd.f32 %v1046_v2, %v930_v1  ;;  %v440_v4 = vpop.f32.mrb[1].mxu0 }
 0x17d   : > { %v441_v5 = vadd.f32 %v930_v1, %v440_v4 }
 0x17e   : > { %1337 = verf.f32 %v446_v3 }
 0x17f   : > { %1339 = verf.f32 %v441_v5  ;;  %v1049_v6 = vpop.f32.mrb[2].mxu0 }
 0x180   : > { %v456_v7 = vadd.f32 %v1049_v6, %v930_v1  ;;  %v450_v8 = vpop.f32.mrb[3].mxu0 }
 0x181   : > { %v451_v10 = vadd.f32 %v930_v1, %v450_v8 }
 0x182   : > { %1341 = verf.f32 %v456_v7 }
 0x183   : > { %1343 = verf.f32 %v451_v10  ;;  %v1052_v11 = vpop.f32.mrb[4].mxu0 }
 0x184   : > { %v466_v12 = vadd.f32 %v1052_v11, %v930_v1  ;;  %v460_v13 = vpop.f32.mrb[5].mxu0 }
 0x185   : > { %v461_v14 = vadd.f32 %v930_v1, %v460_v13 }
 0x186   : > { %1345 = verf.f32 %v466_v12 }
 0x187   : > { %1347 = verf.f32 %v461_v14  ;;  %v1055_v15 = vpop.f32.mrb[6].mxu0 }
 0x188   : > { %v1338_v16 = vpop.eup %1337  ;;  %v476_v17 = vadd.f32 %v1055_v15, %v930_v1  ;;  %v470_v18 = vpop.f32.mrb[7].mxu0 }
 0x189   : > { %v1340_v19 = vpop.eup %1339  ;;  %v488_v20 = vadd.f32 1.0, %v1338_v16  ;;  %v471_v21 = vadd.f32 %v930_v1, %v470_v18  ;;  %v931_v1 = vld [vmem:[%s1938_s4] ss:$0 sm:$0xff] }
 0x18a   : > { %1349 = verf.f32 %v476_v17  ;;  %v487_v22 = vadd.f32 1.0, %v1340_v19 }
 0x18b   : > { %1351 = verf.f32 %v471_v21  ;;  %v496_v26 = vmul.f32 %v488_v20, %v446_v3 }
 0x18c   : > { %v1342_v23 = vpop.eup %1341  ;;  %v495_v24 = vmul.f32 %v487_v22, %v441_v5 }
 0x18d   : > { %v1344_v25 = vpop.eup %1343  ;;  %v490_v27 = vadd.f32 1.0, %v1342_v23 }
 0x18e   : > { %v489_v28 = vadd.f32 1.0, %v1344_v25  ;;  %1088 = vmatprep.mubr.f32.mxu1 %v495_v24 }
 0x18f   : > { %1089 = vmatmul.mubr.f32.vlgmr.msra.gmra.mrb[0].mxu1 %v496_v26  ;;  %v498_v32 = vmul.f32 %v490_v27, %v456_v7 }
 0x190   : > { %v1346_v29 = vpop.eup %1345  ;;  %v497_v30 = vmul.f32 %v489_v28, %v451_v10  ;;  %1248 = vmatpush3.bf16.msra.mxu1 %v1208_v59  ;;  %v667_v59 = vld [vmem:[#allocation8 + $0x60] sm:$0xff] }
 0x191   : > { %v1348_v31 = vpop.eup %1347  ;;  %v492_v33 = vadd.f32 1.0, %v1346_v29  ;;  %1241 = vmatprep.subr.bf16.mxu1 %v1212_v61 }
 0x192   : > { %v491_v41 = vadd.f32 1.0, %v1348_v31  ;;  %1091 = vmatprep.mubr.f32.mxu1 %v497_v30 }
 0x193   : > { %1092 = vmatmul.mubr.f32.gmra.mrb[2].mxu1 %v498_v32  ;;  %v500_v45 = vmul.f32 %v492_v33, %v466_v12 }
 0x194   : > { %v1350_v42 = vpop.eup %1349  ;;  %v499_v43 = vmul.f32 %v491_v41, %v461_v14  ;;  %1249 = vmatpush3.bf16.msra.mxu1 %v1212_v61  ;;  %v1232_v61 = vpack.c.bf16 %v668_v60, %v667_v59 }
 0x195   : > { %v1352_v44 = vpop.eup %1351  ;;  %v494_v46 = vadd.f32 1.0, %v1350_v42  ;;  %1242 = vmatprep.subr.bf16.mxu1 %v1216_v0 }
 0x196   : > { %v493_v47 = vadd.f32 1.0, %v1352_v44  ;;  %1094 = vmatprep.mubr.f32.mxu1 %v499_v43  ;;  %1233 = vmatprep.subr.bf16.mxu0 %v1232_v61 }
 0x197   : > { %1095 = vmatmul.mubr.f32.gmra.mrb[4].mxu1 %v500_v45  ;;  %v502_v49 = vmul.f32 %v494_v46, %v476_v17  ;;  %1235 = vmatpush3.bf16.msra.mxu0 %v1232_v61 }
 0x198   : > { %v501_v48 = vmul.f32 %v493_v47, %v471_v21  ;;  %1250 = vmatpush3.bf16.msra.mxu1 %v1216_v0  ;;  %v1236_v0 = vpack.c.bf16 %v670_v63, %v669_v62 }
 0x199   : > { %1243 = vmatprep.subr.bf16.mxu1 %v1220_v52 }
 0x19a   : > { %1097 = vmatprep.mubr.f32.mxu1 %v501_v48  ;;  %1237 = vmatprep.subr.bf16.mxu0 %v1236_v0 }
 0x19b   : > { %1098 = vmatmul.mubr.f32.gmra.mrb[6].mxu1 %v502_v49  ;;  %1239 = vmatpush3.bf16.msra.mxu0 %v1236_v0 }
 0x19c   : > { %1251 = vmatpush3.bf16.msra.mxu1 %v1220_v52 }
 0x19d   : > { %1244 = vmatprep.subr.bf16.mxu1 %v1224_v55 }
 0x1a0   : > { %1252 = vmatpush3.bf16.msra.mxu1 %v1224_v55 }
 0x1a1   : > { %1245 = vmatprep.subr.bf16.mxu1 %v1228_v58 }
 0x1a4   : > { %1253 = vmatpush3.bf16.msra.mxu1 %v1228_v58 }
 0x1a5   : > { %1246 = vmatprep.subr.bf16.mxu1 %v1232_v61 }
 0x1a8   : > { %1254 = vmatpush3.bf16.msra.mxu1 %v1232_v61 }
 0x1a9   : > { %1247 = vmatprep.subr.bf16.mxu1 %v1236_v0 }
 0x1ac   : > { %1255 = vmatpush3.bf16.msra.mxu1 %v1236_v0 }
 0x262   : > { %v1090_v2 = vpop.f32.mrb[0].mxu1 }
 0x263   : > { %v598_v3 = vadd.f32 %v1090_v2, %v931_v1  ;;  %v592_v4 = vpop.f32.mrb[1].mxu1 }
 0x264   : > { %v593_v5 = vadd.f32 %v931_v1, %v592_v4 }
 0x265   : > { %1353 = verf.f32 %v598_v3 }
 0x266   : > { %1355 = verf.f32 %v593_v5  ;;  %v1093_v6 = vpop.f32.mrb[2].mxu1 }
 0x267   : > { %v608_v7 = vadd.f32 %v1093_v6, %v931_v1  ;;  %v602_v8 = vpop.f32.mrb[3].mxu1 }
 0x268   : > { %v603_v10 = vadd.f32 %v931_v1, %v602_v8 }
 0x269   : > { %1357 = verf.f32 %v608_v7 }
 0x26a   : > { %1359 = verf.f32 %v603_v10  ;;  %v1096_v11 = vpop.f32.mrb[4].mxu1 }
 0x26b   : > { %v618_v12 = vadd.f32 %v1096_v11, %v931_v1  ;;  %v612_v13 = vpop.f32.mrb[5].mxu1 }
 0x26c   : > { %v613_v14 = vadd.f32 %v931_v1, %v612_v13 }
 0x26d   : > { %1361 = verf.f32 %v618_v12 }
 0x26e   : > { %1363 = verf.f32 %v613_v14  ;;  %v1099_v15 = vpop.f32.mrb[6].mxu1 }
 0x26f   : > { %v1354_v16 = vpop.eup %1353  ;;  %v628_v17 = vadd.f32 %v1099_v15, %v931_v1  ;;  %v622_v18 = vpop.f32.mrb[7].mxu1 }
 0x270   : > { %v1356_v19 = vpop.eup %1355  ;;  %v640_v20 = vadd.f32 1.0, %v1354_v16  ;;  %v623_v21 = vadd.f32 %v931_v1, %v622_v18 }
 0x271   : > { %v639_v22 = vadd.f32 1.0, %v1356_v19  ;;  %1365 = verf.f32 %v628_v17 }
 0x272   : > { %1367 = verf.f32 %v623_v21  ;;  %v648_v26 = vmul.f32 %v640_v20, %v598_v3 }
 0x273   : > { %v1358_v23 = vpop.eup %1357  ;;  %v647_v24 = vmul.f32 %v639_v22, %v593_v5 }
 0x274   : > { %v1360_v25 = vpop.eup %1359  ;;  %v642_v27 = vadd.f32 1.0, %v1358_v23 }
 0x275   : > { %v641_v28 = vadd.f32 1.0, %v1360_v25  ;;  %1132 = vmatprep.mubr.f32.mxu0 %v647_v24 }
 0x276   : > { %1133 = vmatmul.mubr.f32.vlgmr.msra.gmra.mrb[8].mxu0 %v648_v26  ;;  %v650_v32 = vmul.f32 %v642_v27, %v608_v7 }
 0x277   : > { %v1362_v29 = vpop.eup %1361  ;;  %v649_v30 = vmul.f32 %v641_v28, %v603_v10 }
 0x278   : > { %v1364_v31 = vpop.eup %1363  ;;  %v644_v33 = vadd.f32 1.0, %v1362_v29 }
 0x279   : > { %v643_v41 = vadd.f32 1.0, %v1364_v31  ;;  %1135 = vmatprep.mubr.f32.mxu0 %v649_v30 }
 0x27a   : > { %1136 = vmatmul.mubr.f32.gmra.mrb[10].mxu0 %v650_v32  ;;  %v652_v45 = vmul.f32 %v644_v33, %v618_v12 }
 0x27b   : > { %v1366_v42 = vpop.eup %1365  ;;  %v651_v43 = vmul.f32 %v643_v41, %v613_v14 }
 0x27c   : > { %v1368_v44 = vpop.eup %1367  ;;  %v646_v46 = vadd.f32 1.0, %v1366_v42 }
 0x27d   : > { %v645_v47 = vadd.f32 1.0, %v1368_v44  ;;  %1138 = vmatprep.mubr.f32.mxu1 %v651_v43 }
 0x27e   : > { %1139 = vmatmul.mubr.f32.vlgmr.msra.gmra.mrb[8].mxu1 %v652_v45  ;;  %v654_v49 = vmul.f32 %v646_v46, %v628_v17 }
 0x27f   : > { %v653_v48 = vmul.f32 %v645_v47, %v623_v21 }
 0x281   : > { %1141 = vmatprep.mubr.f32.mxu1 %v653_v48 }
 0x282   : > { %1142 = vmatmul.mubr.f32.gmra.mrb[10].mxu1 %v654_v49 }
 0x349   : > { %v1134_v51 = vpop.f32.mrb[8].mxu0 }
 0x34a   : > { %v750_v52 = vadd.f32 %v1134_v51, %v932_v50  ;;  %v744_v53 = vpop.f32.mrb[9].mxu0 }
 0x34b   : > { %v745_v54 = vadd.f32 %v932_v50, %v744_v53 }
 0x34c   : > { %v784_v55 = vadd.f32 %v750_v52, %v1838_v34 }
 0x34d   : > { %v783_v56 = vadd.f32 %v745_v54, %v1834_v9  ;;  %v1137_v57 = vpop.f32.mrb[10].mxu0 }
 0x34e   : > { %792 = vst [vmem:[%s340_s12 + $0x8] sm:$0xff] %v784_v55  ;;  %v760_v58 = vadd.f32 %v1137_v57, %v932_v50  ;;  %v754_v59 = vpop.f32.mrb[11].mxu0 }
 0x34f   : > { %791 = vst [vmem:[%s340_s12] sm:$0xff] %v783_v56  ;;  %v755_v60 = vadd.f32 %v932_v50, %v754_v59 }
 0x350   : > { %v786_v61 = vadd.f32 %v760_v58, %v1846_v36 }
 0x351   : > { %v785_v62 = vadd.f32 %v755_v60, %v1841_v35  ;;  %v1140_v63 = vpop.f32.mrb[8].mxu1 }
 0x352   : > { %794 = vst [vmem:[%s340_s12 + $0x18] sm:$0xff] %v786_v61  ;;  %v770_v0 = vadd.f32 %v1140_v63, %v932_v50  ;;  %v764_v1 = vpop.f32.mrb[9].mxu1 }
 0x353   : > { %793 = vst [vmem:[%s340_s12 + $0x10] sm:$0xff] %v785_v62  ;;  %v765_v34 = vadd.f32 %v932_v50, %v764_v1 }
 0x354   : > { %v788_v9 = vadd.f32 %v770_v0, %v1854_v38 }
 0x355   : > { %v787_v2 = vadd.f32 %v765_v34, %v1849_v37  ;;  %v1143_v3 = vpop.f32.mrb[10].mxu1 }
 0x356   : > { %796 = vst [vmem:[%s340_s12 + $0x28] sm:$0xff] %v788_v9  ;;  %v780_v4 = vadd.f32 %v1143_v3, %v932_v50  ;;  %v774_v36 = vpop.f32.mrb[11].mxu1 }
 0x357   : > { %795 = vst [vmem:[%s340_s12 + $0x20] sm:$0xff] %v787_v2  ;;  %v775_v35 = vadd.f32 %v932_v50, %v774_v36 }
 0x358   : > { %v790_v5 = vadd.f32 %v780_v4, %v1862_v40 }
 0x359   : > { %v789_v37 = vadd.f32 %v775_v35, %v1857_v39 }
 0x35a   : > { %798 = vst [vmem:[%s340_s12 + $0x38] sm:$0xff] %v790_v5 }
 0x35b   : > { %797 = vst [vmem:[%s340_s12 + $0x30] sm:$0xff] %v789_v37 }
 0x35c   : > { %1496 = shalt.err (!%p1493_p4)
}
 0x35d   : > { %s1497_s13 = scalar_lea.hbm %s1889_s23, 1024  ;;  %s1501_s14 = scalar_lea.hbm %s1941_s7, 2048 }
 0x35e   : > { %p1498_p9 = scmp.ne.s32.totalorder %s1889_s23, %s1497_s13  ;;  %p1502_p8 = scmp.lt.u32.totalorder %s1889_s23, %s1941_s7 }
 0x35f   : > { %p1503_p13 = scmp.lt.u32.totalorder %s1501_s14, %s1497_s13  ;;  %p1505_p10 = scmp.lt.u32.totalorder %s1497_s13, %s1889_s23 }
 0x360   : > { %p1499_p0 = pnand %p1498_p9, %p1762_p5 }
 0x361   : > { %p1504_p6 = por %p1503_p13, %p1502_p8 }
 0x362   : > { %p1500_p11 = pneg %p1499_p0 }
 0x363   : > { %p1506_p3 = por %p1505_p10, %p1504_p6 }
 0x365   : > { %p1507_p7 = pnand %p1506_p3, %p1500_p11 }
 0x367   : > { %1510 = shalt.err (!%p1507_p7)
}
 0x368   : > { %s1566_s16 = smov 128   ;;  %s1567_s29 = smov 8  }
 0x369   : > { %1270 = dma.vmem_to_hbm [thread:$0]  (%p1762_p5), %s1883_s20, 1024, %s1889_s23, %s800_s28, %s1566_s16, %s1566_s16, %s1567_s29  }
 0x36a PF: > { %s1961_s11 = sld [smem:[#allocation15_spill]]  ;;  %s828_s8 = sand.u32 1, %s1545_s24  }
 0x36b   : > { %p1963_p1 = scmp.ge.s32.totalorder %s1557_s27, 2  ;;  %s829_s30 = scalar_lea.sflag [#allocation4], %s828_s8 }
 0x370   : > { %p1962_p12 = scmp.ne.s32.totalorder %s1961_s11, 0 }
 0x372   : > { %p1287_p2 = pnand %p1963_p1, %p1962_p12 }
 0x374   : > { %1540 = dma.done.wait (!%p1287_p2), %s829_s30, 1024  }
 0x375   : > { %1542 = vsyncadd (!%p1287_p2), %s829_s30, 4294966272  ;;  %p22_p4 = scmp.ge.s32.totalorder %s1748_s22, 4   ;;  %s1964_s24 = smov %s1549_s25 }
 0x376   : > { %s1965_s25 = smov %s1553_s26  ;;  %s1966_s26 = smov %s1758_s18 }
 0x377   : > { %s1967_s27 = smov %s1748_s22  ;;  %24 = sbr.rel (!%p22_p4) target bundleno = 7 (0x7), region = 105 }
 0x37e   :  { %834 = vsyncpa [#allocation3], 1 }
 0x37f   :  { %836 = vsyncpa [#allocation3 + $0x1], 1 }
 0x380   :  { %837 = vsyncpa [#allocation6], 1 }
 0x381   :  { %838 = vsyncpa [#allocation9], 1 }
 0x382   :  { %839 = vsyncpa [#allocation4], 1 }
 0x383   :  { %841 = vsyncpa [#allocation4 + $0x1], 1 }

</bundles_post_ra>
